<compile_context>
chip_gen: v7x
topology: tpu7x:2x2x1
jax: 0.10.0
libtpu: 0.0.40
codegen_flags: <defaults>
</compile_context>

<pallas_src>
import functools

import numpy as np
import jax
import jax.numpy as jnp
from jax import lax
from jax.experimental import pallas as pl
from jax.experimental.pallas import tpu as pltpu

SCALE = 0.7978845608028654
LANES = 128
K1 = 8 * 9 * 9          # 648  (c, kh, kw) im2col feature size of conv1
K1P = 768               # K padded to a multiple of 128


def _round_up(x, m):
    return (x + m - 1) // m * m


# ----------------------------- Pallas kernel --------------------------------
def _fused_kernel(p_ref, w1_ref, b1_ref, w2_ref, b2_ref, o_ref, v1_ref, *, seg_rows):
    """conv1 GEMM (+bias) fused with the conv-transpose tap GEMMs (+bias, folded scale).

    p_ref : (4*seg_rows, 768)  bf16  tap-major im2col rows; segment t = tap (kh,kw)
                                     with t = kh*2+kw, row in segment = n*9 + m*3 + k
    w1_ref: (768, 128)         bf16  conv1 weight, lane = out-channel (26 real)
    b1_ref: (1, 128)           f32   conv1 bias (lane-padded)
    w2_ref: (4, 128, 128)      bf16  conv-transpose taps [kh*2+kw][ci, co], pre-scaled
    b2_ref: (1, 128)           f32   conv-transpose bias, pre-scaled
    o_ref : (seg_rows, 128)    f32   odd-position conv-transpose outputs (dense)
    v1_ref: (4*seg_rows, 128)  f32   VMEM scratch holding conv1 output (channels-last)
    """
    # --- conv1 as one lane-dense bf16 GEMM on the MXU ------------------------
    v1_ref[...] = (
        jnp.dot(p_ref[...], w1_ref[...], preferred_element_type=jnp.float32)
        + b1_ref[...]
    )

    # --- conv_transpose ------------------------------------------------------
    # For kernel=2, stride=2, padding=3, dilation=2, output_padding=2 on a 5x5
    # input, only odd output positions (oh, ow) = (2m+1, 2k+1), m,k in {0,1,2},
    # receive any conv contribution:
    #   out[n, co, 2m+1, 2k+1] = b2 + sum_{kh,kw} sum_ci
    #       v1[n, ci, m+2-kh, k+2-kw] * w2[ci, co, kh, kw]
    # P was built tap-major, so tap t only needs the contiguous rows
    # [t*seg_rows, (t+1)*seg_rows) of v1 -> 4 dense matmuls, one VPU-add chain.
    acc = jnp.broadcast_to(b2_ref[...], (seg_rows, LANES))
    for t in range(4):
        lhs = v1_ref[t * seg_rows:(t + 1) * seg_rows, :].astype(jnp.bfloat16)
        acc = acc + jnp.dot(lhs, w2_ref[t], preferred_element_type=jnp.float32)
    o_ref[...] = acc                                  # single dense lane-dense store


def fused_forward_gemm(p, w1mat, b1, w2taps, b2, *, seg_rows):
    m_rows, k_dim = p.shape
    kernel = functools.partial(_fused_kernel, seg_rows=seg_rows)
    return pl.pallas_call(
        kernel,
        out_shape=jax.ShapeDtypeStruct((seg_rows, LANES), jnp.float32),
        grid=(1,),
        in_specs=[
            pl.BlockSpec((m_rows, k_dim), lambda i: (0, 0)),
            pl.BlockSpec((k_dim, LANES), lambda i: (0, 0)),
            pl.BlockSpec((1, LANES), lambda i: (0, 0)),
            pl.BlockSpec((4, LANES, LANES), lambda i: (0, 0, 0)),
            pl.BlockSpec((1, LANES), lambda i: (0, 0)),
        ],
        out_specs=pl.BlockSpec((seg_rows, LANES), lambda i: (0, 0)),
        scratch_shapes=[pltpu.VMEM((m_rows, LANES), jnp.float32)],
        compiler_params=pltpu.CompilerParams(dimension_semantics=("arbitrary",)),
    )(p, w1mat, b1, w2taps, b2)


# ------------------------------- JAX glue ------------------------------------
def prepare_params(w1, b1, w2, b2):
    """One-time layout / pad / scale prep (hoisted out of the per-call path)."""
    oc1 = w1.shape[0]                                   # 26
    ic2, oc2 = w2.shape[0], w2.shape[1]                 # 26, 9
    w1mat = jnp.pad(w1.reshape(oc1, K1).T, ((0, K1P - K1), (0, LANES - oc1)))
    b1p = jnp.pad(b1, (0, LANES - oc1)).reshape(1, LANES).astype(jnp.float32)
    # w2taps[kh*2+kw][ci, co] = w2[ci, co, kh, kw] * SCALE   (scale folded once)
    w2t = jnp.transpose(w2, (2, 3, 0, 1)).reshape(4, ic2, oc2) * SCALE
    w2p = jnp.pad(w2t, ((0, 0), (0, LANES - ic2), (0, LANES - oc2)))
    b2p = (jnp.pad(b2, (0, LANES - oc2)) * SCALE).reshape(1, LANES).astype(jnp.float32)
    return {
        "w1mat": w1mat.astype(jnp.bfloat16),
        "b1": b1p,
        "w2taps": w2p.astype(jnp.bfloat16),
        "b2": b2p,
        "b2_canvas": (b2 * SCALE).astype(jnp.float32),   # for the wrapper bias canvas
    }


@jax.jit
def model_forward(x, kp):
    n = x.shape[0]
    seg = _round_up(n * 9, 8)                            # rows per tap segment (24)

    # --- im2col for the central 4x4 conv positions via shifted slices --------
    # (only positions ih, iw in 1..4 ever reach the conv-transpose output; pure
    #  data movement, no identity-conv FLOPs).  Feature order (c, ph, pw) matches
    #  w1.reshape(26, 648) of the OIHW weight.
    slabs = [x[:, :, 1 + ph:5 + ph, 1 + pw:5 + pw]
             for ph in range(9) for pw in range(9)]      # 81 x (N, 8, 4, 4)
    pat = jnp.stack(slabs, axis=-1)                      # (N, 8, 4, 4, 81)
    pat = pat.transpose(0, 2, 3, 1, 4).reshape(n, 4, 4, K1)

    # --- tap-major P: 4 contiguous segments, one per conv-transpose tap ------
    # tap (kh, kw) needs conv positions (ih, iw) = (m+2-kh, k+2-kw), i.e. the
    # 3x3 window of `pat` starting at (1-kh, 1-kw).
    segs = []
    for kh in range(2):
        for kw in range(2):
            w = pat[:, 1 - kh:4 - kh, 1 - kw:4 - kw, :].reshape(n * 9, K1)
            segs.append(jnp.pad(w, ((0, seg - n * 9), (0, K1P - K1))))
    p_big = jnp.concatenate(segs, axis=0).astype(jnp.bfloat16)   # (4*seg, 768)

    out2d = fused_forward_gemm(p_big, kp["w1mat"], kp["b1"], kp["w2taps"], kp["b2"],
                               seg_rows=seg)             # (seg, 128) f32

    # --- 7x7 bias canvas + scatter of the 9 odd positions (wrapper side) -----
    compact = out2d[: n * 9, :9].reshape(n, 3, 3, 9)     # (n, m, k, co)
    canvas = jnp.broadcast_to(kp["b2_canvas"].reshape(1, 1, 1, 9), (n, 7, 7, 9))
    canvas = canvas.at[:, 1:6:2, 1:6:2, :].set(compact)  # odd (oh, ow) positions
    v4 = canvas.transpose(0, 3, 1, 2)                    # NCHW (n, 9, 7, 7)
    v5 = v4.reshape(n, -1)                               # (N, 441)
    # TODO(synk): the original module reshapes v5 to (N, 18, 2, 4); 9*7*7 = 441
    # != 144, so that reshape is invalid even in PyTorch — returning v5 instead.
    return v5


# ------------------------------ reference ------------------------------------
def ref_conv_transpose(x, w, b, s, p, d, op):
    x = np.asarray(x, np.float32)
    w = np.asarray(w, np.float32)
    b = np.asarray(b, np.float32)
    N, IC, H, W = x.shape
    _, OC, KH, KW = w.shape
    OH = (H - 1) * s - 2 * p + d * (KH - 1) + op + 1
    OW = (W - 1) * s - 2 * p + d * (KW - 1) + op + 1
    out = np.tile(b.reshape(1, OC, 1, 1), (N, 1, OH, OW)).astype(np.float32)
    for ih in range(H):
        for iw in range(W):
            for kh in range(KH):
                for kw in range(KW):
                    oh = ih * s + kh * d - p
                    ow = iw * s + kw * d - p
                    if 0 <= oh < OH and 0 <= ow < OW:
                        out[:, :, oh, ow] += x[:, :, ih, iw] @ w[:, :, kh, kw]
    return out


if __name__ == "__main__":
    key = jax.random.PRNGKey(0)
    k1, k2, k3, k4, kx = jax.random.split(key, 5)

    # Conv2d(8, 26, 9) and ConvTranspose2d(26, 9, 2, stride=2, padding=3,
    # dilation=2, output_padding=2) parameters, deterministic init.
    fan1 = 8 * 9 * 9
    fan2 = 26 * 2 * 2
    raw = {
        "w1": jax.random.normal(k1, (26, 8, 9, 9), jnp.float32) / np.sqrt(fan1),
        "b1": jax.random.normal(k2, (26,), jnp.float32) * 0.05,
        "w2": jax.random.normal(k3, (26, 9, 2, 2), jnp.float32) / np.sqrt(fan2),
        "b2": jax.random.normal(k4, (9,), jnp.float32) * 0.05,
    }
    kparams = prepare_params(**raw)

    # batch=2, channels=8, spatial=13x13 (implied by the reshape to (N, 26, 5, 5))
    x = jax.random.normal(kx, (2, 8, 13, 13), jnp.float32)

    out = jax.block_until_ready(model_forward(x, kparams))
    assert out.shape == (2, 9 * 7 * 7), out.shape

    # ----- correctness check vs. XLA conv + naive conv_transpose reference -----
    ref_v1 = lax.conv_general_dilated(
        x, raw["w1"], window_strides=(1, 1), padding="VALID",
        dimension_numbers=("NCHW", "OIHW", "NCHW"),
        precision=lax.Precision.HIGHEST) + raw["b1"].reshape(1, -1, 1, 1)
    ref_v4 = ref_conv_transpose(ref_v1, raw["w2"], raw["b2"],
                                s=2, p=3, d=2, op=2) * SCALE
    ref_v5 = ref_v4.reshape(2, -1)
    np.testing.assert_allclose(np.asarray(out), ref_v5, rtol=2e-2, atol=3e-2)

    print("KERNEL_OK")
</pallas_src>

<mosaic_0001>
module attributes {stable_mosaic.version = 11 : i64} {
  func.func @_fused_kernel(%arg0: i32, %arg1: memref<96x768xbf16, #tpu.memory_space<vmem>>, %arg2: memref<768x128xbf16, #tpu.memory_space<vmem>>, %arg3: memref<1x128xf32, #tpu.memory_space<vmem>>, %arg4: memref<4x128x128xbf16, #tpu.memory_space<vmem>>, %arg5: memref<1x128xf32, #tpu.memory_space<vmem>>, %arg6: memref<24x128xf32, #tpu.memory_space<vmem>>, %arg7: memref<96x128xf32, #tpu.memory_space<vmem>>) attributes {dimension_semantics = [#tpu.dimension_semantics<arbitrary>], iteration_bounds = array<i64: 1>, scalar_prefetch = 0 : i64, scratch_operands = 1 : i64, tpu.core_type = #tpu.core_type<tc>, window_params = [{pipeline_mode = #tpu.pipeline_mode<synchronous>, transform_indices = @transform_0, window_bounds = array<i64: 96, 768>}, {pipeline_mode = #tpu.pipeline_mode<synchronous>, transform_indices = @transform_1, window_bounds = array<i64: 768, 128>}, {pipeline_mode = #tpu.pipeline_mode<synchronous>, transform_indices = @transform_2, window_bounds = array<i64: 1, 128>}, {pipeline_mode = #tpu.pipeline_mode<synchronous>, transform_indices = @transform_3, window_bounds = array<i64: 4, 128, 128>}, {pipeline_mode = #tpu.pipeline_mode<synchronous>, transform_indices = @transform_4, window_bounds = array<i64: 1, 128>}, {pipeline_mode = #tpu.pipeline_mode<synchronous>, transform_indices = @transform_5, window_bounds = array<i64: 24, 128>}]} {
    %c0 = arith.constant 0 : index
    %c0_0 = arith.constant 0 : index
    %0 = vector.load %arg1[%c0, %c0_0] : memref<96x768xbf16, #tpu.memory_space<vmem>>, vector<96x768xbf16>
    %c0_1 = arith.constant 0 : index
    %c0_2 = arith.constant 0 : index
    %1 = vector.load %arg2[%c0_1, %c0_2] : memref<768x128xbf16, #tpu.memory_space<vmem>>, vector<768x128xbf16>
    %cst = arith.constant dense<0.000000e+00> : vector<96x128xf32>
    %2 = tpu.matmul %0, %1, %cst {dimension_numbers = #tpu.dot_dimension_numbers<[1], [0], [0], [1], [0, 0, 1, 1], [], []>} : vector<96x768xbf16>, vector<768x128xbf16>, vector<96x128xf32> -> vector<96x128xf32>
    %c0_3 = arith.constant 0 : index
    %c0_4 = arith.constant 0 : index
    %3 = vector.load %arg3[%c0_3, %c0_4] : memref<1x128xf32, #tpu.memory_space<vmem>>, vector<1x128xf32>
    %4 = vector.broadcast %3 : vector<1x128xf32> to vector<96x128xf32>
    %5 = arith.addf %2, %4 : vector<96x128xf32>
    %c0_5 = arith.constant 0 : index
    %c0_6 = arith.constant 0 : index
    %6 = vector.load %arg7[%c0_5, %c0_6] : memref<96x128xf32, #tpu.memory_space<vmem>>, vector<96x128xf32>
    tpu.vector_store %arg7[%c0_5, %c0_6], %5 {strides = array<i32>} : memref<96x128xf32, #tpu.memory_space<vmem>>, vector<96x128xf32>,
    %c0_7 = arith.constant 0 : index
    %c0_8 = arith.constant 0 : index
    %7 = vector.load %arg5[%c0_7, %c0_8] : memref<1x128xf32, #tpu.memory_space<vmem>>, vector<1x128xf32>
    %8 = vector.shape_cast %7 : vector<1x128xf32> to vector<1x128xf32>
    %9 = vector.broadcast %8 : vector<1x128xf32> to vector<24x128xf32>
    %c0_9 = arith.constant 0 : index
    %c0_10 = arith.constant 0 : index
    %10 = vector.load %arg7[%c0_9, %c0_10] : memref<96x128xf32, #tpu.memory_space<vmem>>, vector<24x128xf32>
    %11 = arith.truncf %10 : vector<24x128xf32> to vector<24x128xbf16>
    %c0_11 = arith.constant 0 : index
    %c0_12 = arith.constant 0 : index
    %c0_13 = arith.constant 0 : index
    %12 = vector.load %arg4[%c0_11, %c0_12, %c0_13] : memref<4x128x128xbf16, #tpu.memory_space<vmem>>, vector<1x128x128xbf16>
    %13 = vector.shape_cast %12 : vector<1x128x128xbf16> to vector<128x128xbf16>
    %cst_14 = arith.constant dense<0.000000e+00> : vector<24x128xf32>
    %14 = tpu.matmul %11, %13, %cst_14 {dimension_numbers = #tpu.dot_dimension_numbers<[1], [0], [0], [1], [0, 0, 1, 1], [], []>} : vector<24x128xbf16>, vector<128x128xbf16>, vector<24x128xf32> -> vector<24x128xf32>
    %15 = arith.addf %9, %14 : vector<24x128xf32>
    %c24 = arith.constant 24 : index
    %c0_15 = arith.constant 0 : index
    %16 = vector.load %arg7[%c24, %c0_15] : memref<96x128xf32, #tpu.memory_space<vmem>>, vector<24x128xf32>
    %17 = arith.truncf %16 : vector<24x128xf32> to vector<24x128xbf16>
    %c1 = arith.constant 1 : index
    %c0_16 = arith.constant 0 : index
    %c0_17 = arith.constant 0 : index
    %18 = vector.load %arg4[%c1, %c0_16, %c0_17] : memref<4x128x128xbf16, #tpu.memory_space<vmem>>, vector<1x128x128xbf16>
    %19 = vector.shape_cast %18 : vector<1x128x128xbf16> to vector<128x128xbf16>
    %cst_18 = arith.constant dense<0.000000e+00> : vector<24x128xf32>
    %20 = tpu.matmul %17, %19, %cst_18 {dimension_numbers = #tpu.dot_dimension_numbers<[1], [0], [0], [1], [0, 0, 1, 1], [], []>} : vector<24x128xbf16>, vector<128x128xbf16>, vector<24x128xf32> -> vector<24x128xf32>
    %21 = arith.addf %15, %20 : vector<24x128xf32>
    %c48 = arith.constant 48 : index
    %c0_19 = arith.constant 0 : index
    %22 = vector.load %arg7[%c48, %c0_19] : memref<96x128xf32, #tpu.memory_space<vmem>>, vector<24x128xf32>
    %23 = arith.truncf %22 : vector<24x128xf32> to vector<24x128xbf16>
    %c2 = arith.constant 2 : index
    %c0_20 = arith.constant 0 : index
    %c0_21 = arith.constant 0 : index
    %24 = vector.load %arg4[%c2, %c0_20, %c0_21] : memref<4x128x128xbf16, #tpu.memory_space<vmem>>, vector<1x128x128xbf16>
    %25 = vector.shape_cast %24 : vector<1x128x128xbf16> to vector<128x128xbf16>
    %cst_22 = arith.constant dense<0.000000e+00> : vector<24x128xf32>
    %26 = tpu.matmul %23, %25, %cst_22 {dimension_numbers = #tpu.dot_dimension_numbers<[1], [0], [0], [1], [0, 0, 1, 1], [], []>} : vector<24x128xbf16>, vector<128x128xbf16>, vector<24x128xf32> -> vector<24x128xf32>
    %27 = arith.addf %21, %26 : vector<24x128xf32>
    %c72 = arith.constant 72 : index
    %c0_23 = arith.constant 0 : index
    %28 = vector.load %arg7[%c72, %c0_23] : memref<96x128xf32, #tpu.memory_space<vmem>>, vector<24x128xf32>
    %29 = arith.truncf %28 : vector<24x128xf32> to vector<24x128xbf16>
    %c3 = arith.constant 3 : index
    %c0_24 = arith.constant 0 : index
    %c0_25 = arith.constant 0 : index
    %30 = vector.load %arg4[%c3, %c0_24, %c0_25] : memref<4x128x128xbf16, #tpu.memory_space<vmem>>, vector<1x128x128xbf16>
    %31 = vector.shape_cast %30 : vector<1x128x128xbf16> to vector<128x128xbf16>
    %cst_26 = arith.constant dense<0.000000e+00> : vector<24x128xf32>
    %32 = tpu.matmul %29, %31, %cst_26 {dimension_numbers = #tpu.dot_dimension_numbers<[1], [0], [0], [1], [0, 0, 1, 1], [], []>} : vector<24x128xbf16>, vector<128x128xbf16>, vector<24x128xf32> -> vector<24x128xf32>
    %33 = arith.addf %27, %32 : vector<24x128xf32>
    %c0_27 = arith.constant 0 : index
    %c0_28 = arith.constant 0 : index
    %34 = vector.load %arg6[%c0_27, %c0_28] : memref<24x128xf32, #tpu.memory_space<vmem>>, vector<24x128xf32>
    tpu.vector_store %arg6[%c0_27, %c0_28], %33 {strides = array<i32>} : memref<24x128xf32, #tpu.memory_space<vmem>>, vector<24x128xf32>,
    return
  }
  func.func @transform_0(%arg0: i32) -> (i32, i32) {
    %c0_i32 = arith.constant 0 : i32
    %c0_i32_0 = arith.constant 0 : i32
    %c0_i32_1 = arith.constant 0 : i32
    return %c0_i32, %c0_i32_0 : i32, i32
  }
  func.func @transform_1(%arg0: i32) -> (i32, i32) {
    %c0_i32 = arith.constant 0 : i32
    %c0_i32_0 = arith.constant 0 : i32
    %c0_i32_1 = arith.constant 0 : i32
    return %c0_i32, %c0_i32_0 : i32, i32
  }
  func.func @transform_2(%arg0: i32) -> (i32, i32) {
    %c0_i32 = arith.constant 0 : i32
    %c0_i32_0 = arith.constant 0 : i32
    %c0_i32_1 = arith.constant 0 : i32
    return %c0_i32, %c0_i32_0 : i32, i32
  }
  func.func @transform_3(%arg0: i32) -> (i32, i32, i32) {
    %c0_i32 = arith.constant 0 : i32
    %c0_i32_0 = arith.constant 0 : i32
    %c0_i32_1 = arith.constant 0 : i32
    %c0_i32_2 = arith.constant 0 : i32
    return %c0_i32, %c0_i32_0, %c0_i32_1 : i32, i32, i32
  }
  func.func @transform_4(%arg0: i32) -> (i32, i32) {
    %c0_i32 = arith.constant 0 : i32
    %c0_i32_0 = arith.constant 0 : i32
    %c0_i32_1 = arith.constant 0 : i32
    return %c0_i32, %c0_i32_0 : i32, i32
  }
  func.func @transform_5(%arg0: i32) -> (i32, i32) {
    %c0_i32 = arith.constant 0 : i32
    %c0_i32_0 = arith.constant 0 : i32
    %c0_i32_1 = arith.constant 0 : i32
    return %c0_i32, %c0_i32_0 : i32, i32
  }
}

</mosaic_0001>

<bundles_post_ra>
// kernel: model_forward.1
= control target key start
LH: loop header
LB: loop body
LE: loop exit
PB: predicated region body
PF: predicated region fallthrough
CT: control target
= control target key end

     0   :  { %s2417_s1 = inlined_call_operand.vmem [shape: bf16[768,128], index: 1, kind: input, shape index: {}]   ;;  %s2418_s0 = inlined_call_operand.vmem [shape: bf16[96,768], index: 0, kind: input, shape index: {}]   ;;  %s2419_s3 = inlined_call_operand.vmem [shape: bf16[4,128,128], index: 3, kind: input, shape index: {}]   ;;  %s2420_s2 = inlined_call_operand.vmem [shape: f32[1,128], index: 2, kind: input, shape index: {}]   ;;  %s2421_s4 = inlined_call_operand.vmem [shape: f32[1,128], index: 4, kind: input, shape index: {}]   ;;  %s2422_s5 = inlined_call_operand.vmem [shape: f32[24,128], index: 5, kind: output, shape index: {}]  }
   0x1   :  { %v1836_v0 = vld [vmem:[%s2417_s1 + $0x40] sm:$0xff]   ;;  %v1840_v4 = vld [vmem:[%s2417_s1 + $0x48] sm:$0xff]   ;;  %v1844_v8 = vld [vmem:[%s2417_s1 + $0x50] sm:$0xff]  }
   0x2   :  { %v1837_v1 = vld [vmem:[%s2417_s1] sm:$0xff]   ;;  %1546 = vmatprep.subr.bf16.mxu0 %v1836_v0  ;;  %v1841_v5 = vld [vmem:[%s2417_s1 + $0x8] sm:$0xff]   ;;  %v1845_v9 = vld [vmem:[%s2417_s1 + $0x10] sm:$0xff]  }
   0x3   :  { %v1838_v2 = vld [vmem:[%s2417_s1 + $0xc0] sm:$0xff]   ;;  %1547 = vmatpush3.bf16.msra.mxu0 %v1837_v1  ;;  %v1842_v6 = vld [vmem:[%s2417_s1 + $0xc8] sm:$0xff]   ;;  %v1846_v10 = vld [vmem:[%s2417_s1 + $0xd0] sm:$0xff]  }
   0x4   :  { %v1839_v3 = vld [vmem:[%s2417_s1 + $0x80] sm:$0xff]   ;;  %1598 = vmatprep.subr.bf16.mxu1 %v1838_v2  ;;  %1548 = vmatprep.subr.bf16.mxu0 %v1840_v4  ;;  %v1843_v7 = vld [vmem:[%s2417_s1 + $0x88] sm:$0xff]   ;;  %v1847_v11 = vld [vmem:[%s2417_s1 + $0x90] sm:$0xff]  }
   0x5   :  { %1599 = vmatpush3.bf16.msra.mxu1 %v1839_v3  ;;  %v1848_v12 = vld [vmem:[%s2417_s1 + $0x58] sm:$0xff]   ;;  %v1852_v16 = vld [vmem:[%s2417_s1 + $0x60] sm:$0xff]   ;;  %v1856_v20 = vld [vmem:[%s2417_s1 + $0x68] sm:$0xff]  }
   0x6   :  { %1600 = vmatprep.subr.bf16.mxu1 %v1842_v6  ;;  %v1849_v13 = vld [vmem:[%s2417_s1 + $0x18] sm:$0xff]   ;;  %v1853_v17 = vld [vmem:[%s2417_s1 + $0x20] sm:$0xff]   ;;  %v1857_v21 = vld [vmem:[%s2417_s1 + $0x28] sm:$0xff]  }
   0x7   :  { %1549 = vmatpush3.bf16.msra.mxu0 %v1841_v5  ;;  %v1850_v14 = vld [vmem:[%s2417_s1 + $0xd8] sm:$0xff]   ;;  %v1854_v18 = vld [vmem:[%s2417_s1 + $0xe0] sm:$0xff]   ;;  %v1858_v22 = vld [vmem:[%s2417_s1 + $0xe8] sm:$0xff]  }
   0x8   :  { %1550 = vmatprep.subr.bf16.mxu0 %v1844_v8  ;;  %v1851_v15 = vld [vmem:[%s2417_s1 + $0x98] sm:$0xff]   ;;  %v1855_v19 = vld [vmem:[%s2417_s1 + $0xa0] sm:$0xff]   ;;  %v1859_v23 = vld [vmem:[%s2417_s1 + $0xa8] sm:$0xff]  }
   0x9   :  { %1601 = vmatpush3.bf16.msra.mxu1 %v1843_v7  ;;  %v1860_v24 = vld [vmem:[%s2417_s1 + $0x70] sm:$0xff]   ;;  %v1864_v28 = vld [vmem:[%s2417_s1 + $0x78] sm:$0xff]   ;;  %v1871_v34 = vld [vmem:[%s2417_s1 + $0x140] sm:$0xff]  }
   0xa   :  { %1602 = vmatprep.subr.bf16.mxu1 %v1846_v10  ;;  %v1861_v25 = vld [vmem:[%s2417_s1 + $0x30] sm:$0xff]   ;;  %v1865_v29 = vld [vmem:[%s2417_s1 + $0x38] sm:$0xff]   ;;  %v1872_v35 = vld [vmem:[%s2418_s0 + $0x8] ss:$24 sps:$4 sm:$0xff]  }
   0xb   :  { %1551 = vmatpush3.bf16.msra.mxu0 %v1845_v9  ;;  %v1862_v26 = vld [vmem:[%s2417_s1 + $0xf0] sm:$0xff]   ;;  %v1866_v30 = vld [vmem:[%s2417_s1 + $0xf8] sm:$0xff]   ;;  %v1874_v36 = vld [vmem:[%s2418_s0 + $0xc] ss:$24 sps:$4 sm:$0xff]  }
   0xc   :  { %1552 = vmatprep.subr.bf16.mxu0 %v1848_v12  ;;  %v1863_v27 = vld [vmem:[%s2417_s1 + $0xb0] sm:$0xff]   ;;  %v1867_v31 = vld [vmem:[%s2418_s0] ss:$24 sps:$4 sm:$0xff]   ;;  %v1869_v32 = vld [vmem:[%s2418_s0 + $0x4] ss:$24 sps:$4 sm:$0xff]   ;;  %741 = vmatprep.mubr.bf16.mxu1 %v1874_v36 }
   0xd   :  { %1603 = vmatpush3.bf16.msra.mxu1 %v1847_v11  ;;  %v1870_v33 = vld [vmem:[%s2417_s1 + $0xb8] sm:$0xff]   ;;  %660 = vmatprep.mubr.bf16.mxu0 %v1869_v32  ;;  %v1875_v37 = vld [vmem:[%s2417_s1 + $0x100] sm:$0xff]   ;;  %v1876_v38 = vld [vmem:[%s2417_s1 + $0x148] sm:$0xff]  }
   0xe   :  { %1604 = vmatprep.subr.bf16.mxu1 %v1850_v14  ;;  %v1877_v39 = vld [vmem:[%s2418_s0 + $0x34] ss:$24 sps:$4 sm:$0xff]   ;;  %v1880_v41 = vld [vmem:[%s2418_s0 + $0x30] ss:$24 sps:$4 sm:$0xff]   ;;  %v1886_v46 = vld [vmem:[%s2418_s0 + $0x64] ss:$24 sps:$4 sm:$0xff]  }
   0xf   :  { %1553 = vmatpush3.bf16.msra.mxu0 %v1849_v13  ;;  %v1879_v40 = vld [vmem:[%s2417_s1 + $0x108] sm:$0xff]   ;;  %v1881_v42 = vld [vmem:[%s2418_s0 + $0x3c] ss:$24 sps:$4 sm:$0xff]   ;;  %v1883_v43 = vld [vmem:[%s2418_s0 + $0x38] ss:$24 sps:$4 sm:$0xff]  }
  0x10   :  { %1554 = vmatprep.subr.bf16.mxu0 %v1852_v16  ;;  %v1884_v44 = vld [vmem:[%s2417_s1 + $0x150] sm:$0xff]   ;;  %v1888_v47 = vld [vmem:[%s2418_s0 + $0x60] ss:$24 sps:$4 sm:$0xff]   ;;  %v1889_v48 = vld [vmem:[%s2418_s0 + $0x6c] ss:$24 sps:$4 sm:$0xff]  }
  0x11   :  { %1605 = vmatpush3.bf16.msra.mxu1 %v1851_v15  ;;  %v1885_v45 = vld [vmem:[%s2417_s1 + $0x110] sm:$0xff]   ;;  %v1892_v49 = vld [vmem:[%s2417_s1 + $0x158] sm:$0xff]   ;;  %v1891_v52 = vld [vmem:[%s2418_s0 + $0x68] ss:$24 sps:$4 sm:$0xff]  }
  0x12   :  { %1606 = vmatprep.subr.bf16.mxu1 %v1854_v18  ;;  %v1893_v50 = vld [vmem:[%s2417_s1 + $0x118] sm:$0xff]   ;;  %v1894_v51 = vld [vmem:[%s2418_s0 + $0x94] ss:$24 sps:$4 sm:$0xff]   ;;  %v1897_v53 = vld [vmem:[%s2417_s1 + $0x160] sm:$0xff]  }
  0x13   :  { %1555 = vmatpush3.bf16.msra.mxu0 %v1853_v17  ;;  %v1898_v54 = vld [vmem:[%s2418_s0 + $0x9c] ss:$24 sps:$4 sm:$0xff]   ;;  %v1900_v55 = vld [vmem:[%s2417_s1 + $0x120] sm:$0xff]   ;;  %v1902_v56 = vld [vmem:[%s2417_s1 + $0x168] sm:$0xff]  }
  0x14   :  { %1556 = vmatprep.subr.bf16.mxu0 %v1856_v20  ;;  %v1896_v57 = vld [vmem:[%s2418_s0 + $0x90] ss:$24 sps:$4 sm:$0xff]   ;;  %v1903_v60 = vld [vmem:[%s2418_s0 + $0xc4] ss:$24 sps:$4 sm:$0xff]   ;;  %v1906_v0 = vld [vmem:[%s2418_s0 + $0xc0] ss:$24 sps:$4 sm:$0xff]  }
  0x15   :  { %1607 = vmatpush3.bf16.msra.mxu1 %v1855_v19  ;;  %v1905_v58 = vld [vmem:[%s2417_s1 + $0x128] sm:$0xff]   ;;  %v1901_v59 = vld [vmem:[%s2418_s0 + $0x98] ss:$24 sps:$4 sm:$0xff]   ;;  %v1915_v5 = vld [vmem:[%s2418_s0 + $0xfc] ss:$24 sps:$4 sm:$0xff]  }
  0x16   :  { %1608 = vmatprep.subr.bf16.mxu1 %v1858_v22  ;;  %v1907_v61 = vld [vmem:[%s2418_s0 + $0xcc] ss:$24 sps:$4 sm:$0xff]   ;;  %v1910_v62 = vld [vmem:[%s2417_s1 + $0x170] sm:$0xff]   ;;  %v1918_v1 = vld [vmem:[%s2417_s1 + $0x178] sm:$0xff]  }
  0x17   :  { %1557 = vmatpush3.bf16.msra.mxu0 %v1857_v21  ;;  %v1911_v63 = vld [vmem:[%s2417_s1 + $0x130] sm:$0xff]   ;;  %v1919_v2 = vld [vmem:[%s2417_s1 + $0x138] sm:$0xff]   ;;  %v1909_v4 = vld [vmem:[%s2418_s0 + $0xc8] ss:$24 sps:$4 sm:$0xff]  }
  0x18   :  { %1558 = vmatprep.subr.bf16.mxu0 %v1860_v24  ;;  %v1912_v3 = vld [vmem:[%s2418_s0 + $0xf4] ss:$24 sps:$4 sm:$0xff]   ;;  %v1914_v6 = vld [vmem:[%s2418_s0 + $0xf0] ss:$24 sps:$4 sm:$0xff]   ;;  %v1923_v10 = vld [vmem:[%s2418_s0 + $0x44] ss:$24 sps:$4 sm:$0xff]  }
  0x19   :  { %1609 = vmatpush3.bf16.msra.mxu1 %v1859_v23  ;;  %v1922_v7 = vld [vmem:[%s2418_s0 + $0x14] ss:$24 sps:$4 sm:$0xff]   ;;  %v1917_v8 = vld [vmem:[%s2418_s0 + $0xf8] ss:$24 sps:$4 sm:$0xff]   ;;  %v1929_v14 = vld [vmem:[%s2418_s0 + $0xa4] ss:$24 sps:$4 sm:$0xff]  }
  0x1a   :  { %1610 = vmatprep.subr.bf16.mxu1 %v1862_v26  ;;  %v1920_v9 = vld [vmem:[%s2418_s0 + $0x10] ss:$24 sps:$4 sm:$0xff]   ;;  %v1925_v11 = vld [vmem:[%s2418_s0 + $0x40] ss:$24 sps:$4 sm:$0xff]   ;;  %v1926_v12 = vld [vmem:[%s2418_s0 + $0x74] ss:$24 sps:$4 sm:$0xff]  }
  0x1b   :  { %1559 = vmatpush3.bf16.msra.mxu0 %v1861_v25  ;;  %v1928_v13 = vld [vmem:[%s2418_s0 + $0x70] ss:$24 sps:$4 sm:$0xff]   ;;  %v1931_v15 = vld [vmem:[%s2418_s0 + $0xa0] ss:$24 sps:$4 sm:$0xff]   ;;  %v1932_v16 = vld [vmem:[%s2418_s0 + $0xd4] ss:$24 sps:$4 sm:$0xff]  }
  0x1c   :  { %1560 = vmatprep.subr.bf16.mxu0 %v1864_v28  ;;  %v1934_v17 = vld [vmem:[%s2418_s0 + $0xd0] ss:$24 sps:$4 sm:$0xff]   ;;  %v1935_v18 = vld [vmem:[%s2418_s0 + $0x104] ss:$24 sps:$4 sm:$0xff]   ;;  %v1937_v19 = vld [vmem:[%s2418_s0 + $0x100] ss:$24 sps:$4 sm:$0xff]  }
  0x1d   :  { %1611 = vmatpush3.bf16.msra.mxu1 %v1863_v27  ;;  %v1938_v20 = vld [vmem:[%s2419_s3 + $0x40] sm:$0xff]   ;;  %v1940_v22 = vld [vmem:[%s2419_s3 + $0x48] sm:$0xff]   ;;  %v1943_v24 = vld [vmem:[%s2419_s3 + $0x10] sm:$0xff]  }
  0x1e   :  { %1612 = vmatprep.subr.bf16.mxu1 %v1866_v30  ;;  %v1939_v21 = vld [vmem:[%s2419_s3] sm:$0xff]   ;;  %v1941_v23 = vld [vmem:[%s2419_s3 + $0x8] sm:$0xff]   ;;  %v1942_v25 = vld [vmem:[%s2419_s3 + $0x50] sm:$0xff]  }
  0x1f   :  { %1561 = vmatpush3.bf16.msra.mxu0 %v1865_v29  ;;  %v1944_v26 = vld [vmem:[%s2419_s3 + $0x18] sm:$0xff]   ;;  %v1946_v28 = vld [vmem:[%s2419_s3 + $0x20] sm:$0xff]   ;;  %v1948_v29 = vld [vmem:[%s2419_s3 + $0x28] sm:$0xff]  }
  0x20   :  { %1650 = vmatprep.subr.bf16.mxu0 %v1871_v34  ;;  %v1945_v27 = vld [vmem:[%s2419_s3 + $0x58] sm:$0xff]   ;;  %v1947_v30 = vld [vmem:[%s2419_s3 + $0x60] sm:$0xff]   ;;  %v1950_v32 = vld [vmem:[%s2419_s3 + $0x68] sm:$0xff]  }
  0x21   :  { %1613 = vmatpush3.bf16.msra.mxu1 %v1870_v33  ;;  %v1951_v33 = vld [vmem:[%s2419_s3 + $0x38] sm:$0xff]   ;;  %v1952_v34 = vld [vmem:[%s2419_s3 + $0x70] sm:$0xff]   ;;  %v2303_v36 = vld [vmem:[%s2419_s3 + $0x80] sm:$0xff]  }
  0x22   :  { %661 = vmatmul.mubr.bf16.vlgmr.msra.gmra.mrb[0].mxu0 %v1867_v31  ;;  %1762 = vmatprep.subr.bf16.mxu1 %v1938_v20  ;;  %v1949_v31 = vld [vmem:[%s2419_s3 + $0x30] sm:$0xff]  }
  0x23   :  { %1651 = vmatpush3.bf16.msra.mxu0 %v1875_v37  ;;  %668 = vmatprep.mubr.bf16.mxu0 %v1877_v39 }
  0x24   :  { %742 = vmatmul.mubr.bf16.vlgmr.msra.gmra.mrb[0].mxu1 %v1872_v35  ;;  %1652 = vmatprep.subr.bf16.mxu0 %v1876_v38  ;;  %v1953_v35 = vld [vmem:[%s2419_s3 + $0x78] sm:$0xff]   ;;  %v2309_v38 = vld [vmem:[%s2420_s2] ss:$0 sm:$0xff] }
  0x25   :  { %749 = vmatprep.mubr.bf16.mxu1 %v1881_v42  ;;  %1763 = vmatpush3.bf16.msra.mxu1 %v1938_v20 }
  0x26   :  { %1764 = vmatprep.subr.bf16.mxu1 %v1940_v22 }
  0x27   :  { %1653 = vmatpush3.bf16.msra.mxu0 %v1879_v40 }
  0x28   :  { %1654 = vmatprep.subr.bf16.mxu0 %v1884_v44 }
  0x29   :  { %1765 = vmatpush3.bf16.msra.mxu1 %v1940_v22 }
  0x2a   :  { %669 = vmatmul.mubr.bf16.gmra.mrb[4].mxu0 %v1880_v41  ;;  %1766 = vmatprep.subr.bf16.mxu1 %v1942_v25 }
  0x2b   :  { %1655 = vmatpush3.bf16.msra.mxu0 %v1885_v45  ;;  %676 = vmatprep.mubr.bf16.mxu0 %v1886_v46 }
  0x2c   :  { %750 = vmatmul.mubr.bf16.gmra.mrb[4].mxu1 %v1883_v43  ;;  %1656 = vmatprep.subr.bf16.mxu0 %v1892_v49 }
  0x2d   :  { %757 = vmatprep.mubr.bf16.mxu1 %v1889_v48  ;;  %1767 = vmatpush3.bf16.msra.mxu1 %v1942_v25 }
  0x2e   :  { %1768 = vmatprep.subr.bf16.mxu1 %v1945_v27 }
  0x2f   :  { %1657 = vmatpush3.bf16.msra.mxu0 %v1893_v50 }
  0x30   :  { %1658 = vmatprep.subr.bf16.mxu0 %v1897_v53 }
  0x31   :  { %1769 = vmatpush3.bf16.msra.mxu1 %v1945_v27 }
  0x32   :  { %677 = vmatmul.mubr.bf16.gmra.mrb[8].mxu0 %v1888_v47  ;;  %1770 = vmatprep.subr.bf16.mxu1 %v1947_v30 }
  0x33   :  { %684 = vmatprep.mubr.bf16.mxu0 %v1894_v51  ;;  %1659 = vmatpush3.bf16.msra.mxu0 %v1900_v55 }
  0x34   :  { %758 = vmatmul.mubr.bf16.gmra.mrb[8].mxu1 %v1891_v52  ;;  %1660 = vmatprep.subr.bf16.mxu0 %v1902_v56 }
  0x35   :  { %765 = vmatprep.mubr.bf16.mxu1 %v1898_v54  ;;  %1771 = vmatpush3.bf16.msra.mxu1 %v1947_v30 }
  0x36   :  { %1772 = vmatprep.subr.bf16.mxu1 %v1950_v32 }
  0x37   :  { %1661 = vmatpush3.bf16.msra.mxu0 %v1905_v58 }
  0x38   :  { %1662 = vmatprep.subr.bf16.mxu0 %v1910_v62 }
  0x39   :  { %1773 = vmatpush3.bf16.msra.mxu1 %v1950_v32 }
  0x3a   :  { %685 = vmatmul.mubr.bf16.gmra.mrb[12].mxu0 %v1896_v57  ;;  %1774 = vmatprep.subr.bf16.mxu1 %v1952_v34 }
  0x3b   :  { %692 = vmatprep.mubr.bf16.mxu0 %v1903_v60  ;;  %1663 = vmatpush3.bf16.msra.mxu0 %v1911_v63 }
  0x3c   :  { %766 = vmatmul.mubr.bf16.gmra.mrb[12].mxu1 %v1901_v59  ;;  %1664 = vmatprep.subr.bf16.mxu0 %v1918_v1 }
  0x3d   :  { %773 = vmatprep.mubr.bf16.mxu1 %v1907_v61  ;;  %1775 = vmatpush3.bf16.msra.mxu1 %v1952_v34 }
  0x3e   :  { %1776 = vmatprep.subr.bf16.mxu1 %v1953_v35 }
  0x3f   :  { %1665 = vmatpush3.bf16.msra.mxu0 %v1919_v2 }
  0x40   :  { %1742 = vmatprep.subr.bf16.mxu0 %v1939_v21 }
  0x41   :  { %1777 = vmatpush3.bf16.msra.mxu1 %v1953_v35 }
  0x42   :  { %693 = vmatmul.mubr.bf16.gmra.mrb[16].mxu0 %v1906_v0  ;;  %1782 = vmatprep.subr.bf16.mxu1 %v2303_v36 }
  0x43   :  { %700 = vmatprep.mubr.bf16.mxu0 %v1912_v3 }
  0x44   :  { %774 = vmatmul.mubr.bf16.gmra.mrb[16].mxu1 %v1909_v4 }
  0x45   :  { %781 = vmatprep.mubr.bf16.mxu1 %v1915_v5 }
  0x4a   :  { %701 = vmatmul.mubr.bf16.gmra.mrb[20].mxu0 %v1914_v6 }
  0x4b   :  { %822 = vmatprep.mubr.bf16.mxu0 %v1922_v7 }
  0x4c   :  { %782 = vmatmul.mubr.bf16.gmra.mrb[20].mxu1 %v1917_v8 }
  0x52   :  { %823 = vmatmul.mubr.bf16.vlgmr.msra.gmra.mrb[24].mxu0 %v1920_v9 }
  0x53   :  { %830 = vmatprep.mubr.bf16.mxu0 %v1923_v10  ;;  %1743 = vmatpush3.bf16.msra.mxu0 %v1939_v21 }
  0x54   :  { %1744 = vmatprep.subr.bf16.mxu0 %v1941_v23 }
  0x57   :  { %1745 = vmatpush3.bf16.msra.mxu0 %v1941_v23 }
  0x58   :  { %1746 = vmatprep.subr.bf16.mxu0 %v1943_v24 }
  0x5a   :  { %831 = vmatmul.mubr.bf16.gmra.mrb[28].mxu0 %v1925_v11 }
  0x5b   :  { %838 = vmatprep.mubr.bf16.mxu0 %v1926_v12  ;;  %1747 = vmatpush3.bf16.msra.mxu0 %v1943_v24 }
  0x5c   :  { %1748 = vmatprep.subr.bf16.mxu0 %v1944_v26 }
  0x5f   :  { %1749 = vmatpush3.bf16.msra.mxu0 %v1944_v26 }
  0x60   :  { %1750 = vmatprep.subr.bf16.mxu0 %v1946_v28 }
  0x62   :  { %839 = vmatmul.mubr.bf16.gmra.mrb[32].mxu0 %v1928_v13 }
  0x63   :  { %846 = vmatprep.mubr.bf16.mxu0 %v1929_v14  ;;  %1751 = vmatpush3.bf16.msra.mxu0 %v1946_v28 }
  0x64   :  { %1752 = vmatprep.subr.bf16.mxu0 %v1948_v29 }
  0x67   :  { %1753 = vmatpush3.bf16.msra.mxu0 %v1948_v29 }
  0x68   :  { %1754 = vmatprep.subr.bf16.mxu0 %v1949_v31 }
  0x6a   :  { %847 = vmatmul.mubr.bf16.gmra.mrb[36].mxu0 %v1931_v15 }
  0x6b   :  { %854 = vmatprep.mubr.bf16.mxu0 %v1932_v16  ;;  %1755 = vmatpush3.bf16.msra.mxu0 %v1949_v31 }
  0x6c   :  { %1756 = vmatprep.subr.bf16.mxu0 %v1951_v33 }
  0x6f   :  { %1757 = vmatpush3.bf16.msra.mxu0 %v1951_v33 }
  0x72   :  { %855 = vmatmul.mubr.bf16.gmra.mrb[40].mxu0 %v1934_v17 }
  0x73   :  { %862 = vmatprep.mubr.bf16.mxu0 %v1935_v18 }
  0x7a   :  { %863 = vmatmul.mubr.bf16.gmra.mrb[44].mxu0 %v1937_v19 }
  0xf5   :  { %v1562_v37 = vpop.f32.mrb[0].mxu0 }
  0xf6   :  { %v1563_v39 = vpop.f32.mrb[1].mxu0 }
  0xf7   :  { %v1564_v40 = vadd.f32 %v1563_v39, %v1562_v37  ;;  %v1565_v41 = vpop.f32.mrb[2].mxu0  ;;  %v1614_v42 = vpop.f32.mrb[0].mxu1 }
  0xf8   :  { %v1566_v43 = vpop.f32.mrb[3].mxu0  ;;  %v1615_v46 = vpop.f32.mrb[1].mxu1 }
  0xf9   :  { %v663_v44 = vadd.f32 %v1564_v40, %v2309_v38  ;;  %v1567_v45 = vadd.f32 %v1566_v43, %v1565_v41  ;;  %v1616_v47 = vadd.f32 %v1615_v46, %v1614_v42  ;;  %v1617_v48 = vpop.f32.mrb[2].mxu1 }
  0xfa   :  { %v1618_v50 = vpop.f32.mrb[3].mxu1 }
  0xfb   :  { %v666_v49 = vadd.f32 %v1567_v45, %v2309_v38  ;;  %v2313_v51 = vadd.f32 %v1616_v47, %v663_v44  ;;  %v1619_v52 = vadd.f32 %v1618_v50, %v1617_v48 }
  0xfd   :  { %v1568_v53 = vpop.f32.mrb[4].mxu0  ;;  %v2315_v54 = vadd.f32 %v1619_v52, %v666_v49 }
  0xfe   :  { %v1569_v55 = vpop.f32.mrb[5].mxu0 }
  0xff   :  { %v1570_v56 = vadd.f32 %v1569_v55, %v1568_v53  ;;  %v1571_v57 = vpop.f32.mrb[6].mxu0  ;;  %v1620_v58 = vpop.f32.mrb[4].mxu1 }
 0x100   :  { %v1572_v59 = vpop.f32.mrb[7].mxu0  ;;  %v1621_v62 = vpop.f32.mrb[5].mxu1 }
 0x101   :  { %v671_v60 = vadd.f32 %v1570_v56, %v2309_v38  ;;  %v1573_v61 = vadd.f32 %v1572_v59, %v1571_v57  ;;  %v1622_v63 = vadd.f32 %v1621_v62, %v1620_v58  ;;  %v1623_v0 = vpop.f32.mrb[6].mxu1 }
 0x102   :  { %v1624_v2 = vpop.f32.mrb[7].mxu1 }
 0x103   :  { %v674_v1 = vadd.f32 %v1573_v61, %v2309_v38  ;;  %v2319_v3 = vadd.f32 %v1622_v63, %v671_v60  ;;  %v1625_v4 = vadd.f32 %v1624_v2, %v1623_v0 }
 0x105   :  { %v1574_v5 = vpop.f32.mrb[8].mxu0  ;;  %v2321_v6 = vadd.f32 %v1625_v4, %v674_v1 }
 0x106   :  { %v1575_v7 = vpop.f32.mrb[9].mxu0 }
 0x107   :  { %v1576_v8 = vadd.f32 %v1575_v7, %v1574_v5  ;;  %v1577_v9 = vpop.f32.mrb[10].mxu0  ;;  %v1626_v10 = vpop.f32.mrb[8].mxu1 }
 0x108   :  { %v1578_v11 = vpop.f32.mrb[11].mxu0  ;;  %v1627_v14 = vpop.f32.mrb[9].mxu1 }
 0x109   :  { %v679_v12 = vadd.f32 %v1576_v8, %v2309_v38  ;;  %v1579_v13 = vadd.f32 %v1578_v11, %v1577_v9  ;;  %v1628_v15 = vadd.f32 %v1627_v14, %v1626_v10  ;;  %v1629_v16 = vpop.f32.mrb[10].mxu1 }
 0x10a   :  { %v1630_v18 = vpop.f32.mrb[11].mxu1 }
 0x10b   :  { %v682_v17 = vadd.f32 %v1579_v13, %v2309_v38  ;;  %v2325_v19 = vadd.f32 %v1628_v15, %v679_v12  ;;  %v1631_v20 = vadd.f32 %v1630_v18, %v1629_v16 }
 0x10d   :  { %v1580_v21 = vpop.f32.mrb[12].mxu0  ;;  %v2327_v22 = vadd.f32 %v1631_v20, %v682_v17 }
 0x10e   :  { %v1581_v23 = vpop.f32.mrb[13].mxu0 }
 0x10f   :  { %v1582_v24 = vadd.f32 %v1581_v23, %v1580_v21  ;;  %v1583_v25 = vpop.f32.mrb[14].mxu0  ;;  %v1632_v26 = vpop.f32.mrb[12].mxu1 }
 0x110   :  { %v1584_v27 = vpop.f32.mrb[15].mxu0  ;;  %v1633_v30 = vpop.f32.mrb[13].mxu1 }
 0x111   :  { %v687_v28 = vadd.f32 %v1582_v24, %v2309_v38  ;;  %v1585_v29 = vadd.f32 %v1584_v27, %v1583_v25  ;;  %v1634_v31 = vadd.f32 %v1633_v30, %v1632_v26  ;;  %v1635_v32 = vpop.f32.mrb[14].mxu1 }
 0x112   :  { %v1636_v34 = vpop.f32.mrb[15].mxu1 }
 0x113   :  { %v690_v33 = vadd.f32 %v1585_v29, %v2309_v38  ;;  %v2331_v35 = vadd.f32 %v1634_v31, %v687_v28  ;;  %v1637_v37 = vadd.f32 %v1636_v34, %v1635_v32 }
 0x115   :  { %v1586_v39 = vpop.f32.mrb[16].mxu0  ;;  %v2333_v40 = vadd.f32 %v1637_v37, %v690_v33 }
 0x116   :  { %v1587_v41 = vpop.f32.mrb[17].mxu0 }
 0x117   :  { %v1588_v42 = vadd.f32 %v1587_v41, %v1586_v39  ;;  %v1589_v43 = vpop.f32.mrb[18].mxu0  ;;  %v1638_v44 = vpop.f32.mrb[16].mxu1 }
 0x118   :  { %v1590_v45 = vpop.f32.mrb[19].mxu0  ;;  %v1639_v48 = vpop.f32.mrb[17].mxu1 }
 0x119   :  { %v695_v46 = vadd.f32 %v1588_v42, %v2309_v38  ;;  %v1591_v47 = vadd.f32 %v1590_v45, %v1589_v43  ;;  %v1640_v49 = vadd.f32 %v1639_v48, %v1638_v44  ;;  %v1641_v50 = vpop.f32.mrb[18].mxu1 }
 0x11a   :  { %v1642_v53 = vpop.f32.mrb[19].mxu1 }
 0x11b   :  { %v698_v52 = vadd.f32 %v1591_v47, %v2309_v38  ;;  %v2337_v55 = vadd.f32 %v1640_v49, %v695_v46  ;;  %v1643_v56 = vadd.f32 %v1642_v53, %v1641_v50 }
 0x11d   :  { %v1592_v57 = vpop.f32.mrb[20].mxu0  ;;  %v2339_v58 = vadd.f32 %v1643_v56, %v698_v52  ;;  %v1957_v52 = vld [vmem:[%s2419_s3 + $0x98] sm:$0xff]  }
 0x11e   :  { %v1593_v59 = vpop.f32.mrb[21].mxu0 }
 0x11f   :  { %v1594_v60 = vadd.f32 %v1593_v59, %v1592_v57  ;;  %v1595_v61 = vpop.f32.mrb[22].mxu0  ;;  %v1644_v62 = vpop.f32.mrb[20].mxu1 }
 0x120   :  { %v1596_v63 = vpop.f32.mrb[23].mxu0  ;;  %v1645_v2 = vpop.f32.mrb[21].mxu1 }
 0x121   :  { %v703_v0 = vadd.f32 %v1594_v60, %v2309_v38  ;;  %v1597_v1 = vadd.f32 %v1596_v63, %v1595_v61  ;;  %v1646_v4 = vadd.f32 %v1645_v2, %v1644_v62  ;;  %v1647_v5 = vpop.f32.mrb[22].mxu1  ;;  %v1959_v62 = vld [vmem:[%s2419_s3 + $0xa8] sm:$0xff]  }
 0x122   :  { %v1648_v8 = vpop.f32.mrb[23].mxu1 }
 0x123   :  { %v706_v7 = vadd.f32 %v1597_v1, %v2309_v38  ;;  %v2343_v9 = vadd.f32 %v1646_v4, %v703_v0  ;;  %v1649_v10 = vadd.f32 %v1648_v8, %v1647_v5  ;;  %v1961_v8 = vld [vmem:[%s2419_s3 + $0xb8] sm:$0xff]  }
 0x125   :  { %v1666_v11 = vpop.f32.mrb[24].mxu0  ;;  %v2345_v12 = vadd.f32 %v1649_v10, %v706_v7 }
 0x126   :  { %v1667_v13 = vpop.f32.mrb[25].mxu0 }
 0x127   :  { %v1668_v14 = vadd.f32 %v1667_v13, %v1666_v11  ;;  %v1669_v15 = vpop.f32.mrb[26].mxu0  ;;  %v1963_v11 = vld [vmem:[%s2419_s3 + $0xc8] sm:$0xff]   ;;  %v1965_v13 = vld [vmem:[%s2419_s3 + $0xd8] sm:$0xff]  }
 0x128   :  { %v1670_v16 = vpop.f32.mrb[27].mxu0 }
 0x129   :  { %v825_v17 = vadd.f32 %v1668_v14, %v2313_v51  ;;  %v1671_v18 = vadd.f32 %v1670_v16, %v1669_v15  ;;  %v1966_v14 = vld [vmem:[%s2419_s3 + $0xe0] sm:$0xff]   ;;  %v1967_v15 = vld [vmem:[%s2419_s3 + $0xe8] sm:$0xff]   ;;  %v1968_v16 = vld [vmem:[%s2419_s3 + $0xf0] sm:$0xff]  }
 0x12b   :  { %v828_v20 = vadd.f32 %v1671_v18, %v2315_v54 }
 0x12d   :  { %v1672_v21 = vpop.f32.mrb[28].mxu0  ;;  %v893_v23 = vpack.c.bf16 %v828_v20, %v825_v17  ;;  %v1969_v17 = vld [vmem:[%s2419_s3 + $0xf8] sm:$0xff]  }
 0x12e   :  { %v1673_v24 = vpop.f32.mrb[29].mxu0 }
 0x12f   :  { %v1674_v38 = vadd.f32 %v1673_v24, %v1672_v21  ;;  %v1675_v25 = vpop.f32.mrb[30].mxu0  ;;  %1758 = vmatprep.mubr.bf16.mxu0 %v893_v23 }
 0x130   :  { %v1676_v26 = vpop.f32.mrb[31].mxu0 }
 0x131   :  { %v833_v27 = vadd.f32 %v1674_v38, %v2319_v3  ;;  %v1677_v28 = vadd.f32 %v1676_v26, %v1675_v25  ;;  %v1955_v3 = vld [vmem:[%s2419_s3 + $0x88] sm:$0xff]   ;;  %v1465_v38 = vld [vmem:[%s2421_s4] ss:$0 sm:$0xff] }
 0x133   :  { %v894_v29 = vpack.c.bf16 %v833_v27, %v833_v27  ;;  %v836_v30 = vadd.f32 %v1677_v28, %v2321_v6 }
 0x135   :  { %v1678_v31 = vpop.f32.mrb[32].mxu0  ;;  %1759 = vmatmul.mubr.bf16.vlgmr.msra.gmra.mrb[48].mxu0 %v894_v29 }
 0x136   :  { %v1679_v32 = vpop.f32.mrb[33].mxu0 }
 0x137   :  { %v1680_v51 = vadd.f32 %v1679_v32, %v1678_v31  ;;  %v1681_v33 = vpop.f32.mrb[34].mxu0 }
 0x138   :  { %v1682_v34 = vpop.f32.mrb[35].mxu0 }
 0x139   :  { %v841_v54 = vadd.f32 %v1680_v51, %v2325_v19  ;;  %v1683_v37 = vadd.f32 %v1682_v34, %v1681_v33 }
 0x13b   :  { %v844_v39 = vadd.f32 %v1683_v37, %v2327_v22  ;;  %v1013_v41 = vpack.c.bf16 %v841_v54, %v836_v30  ;;  %v1956_v22 = vld [vmem:[%s2419_s3 + $0x90] sm:$0xff]  }
 0x13d   :  { %v1014_v42 = vpack.c.bf16 %v844_v39, %v844_v39  ;;  %v1684_v43 = vpop.f32.mrb[36].mxu0  ;;  %1778 = vmatprep.mubr.bf16.mxu1 %v1013_v41 }
 0x13e   :  { %v1685_v6 = vpop.f32.mrb[37].mxu0 }
 0x13f   :  { %v1686_v44 = vadd.f32 %v1685_v6, %v1684_v43  ;;  %v1687_v45 = vpop.f32.mrb[38].mxu0  ;;  %1779 = vmatmul.mubr.bf16.vlgmr.msra.gmra.mrb[24].mxu1 %v1014_v42 }
 0x140   :  { %1783 = vmatpush3.bf16.msra.mxu1 %v2303_v36  ;;  %v1688_v46 = vpop.f32.mrb[39].mxu0 }
 0x141   :  { %v849_v19 = vadd.f32 %v1686_v44, %v2331_v35  ;;  %v1689_v47 = vadd.f32 %v1688_v46, %v1687_v45  ;;  %1784 = vmatprep.subr.bf16.mxu1 %v1955_v3 }
 0x143   :  { %v852_v48 = vadd.f32 %v1689_v47, %v2333_v40  ;;  %v1958_v40 = vld [vmem:[%s2419_s3 + $0xa0] sm:$0xff]  }
 0x144   :  { %1785 = vmatpush3.bf16.msra.mxu1 %v1955_v3 }
 0x145   :  { %v1690_v49 = vpop.f32.mrb[40].mxu0  ;;  %1786 = vmatprep.subr.bf16.mxu1 %v1956_v22  ;;  %v1134_v50 = vpack.c.bf16 %v852_v48, %v849_v19 }
 0x146   :  { %v1691_v36 = vpop.f32.mrb[41].mxu0 }
 0x147   :  { %v1692_v53 = vadd.f32 %v1691_v36, %v1690_v49  ;;  %v1693_v56 = vpop.f32.mrb[42].mxu0  ;;  %1798 = vmatprep.mubr.bf16.mxu1 %v1134_v50 }
 0x148   :  { %1787 = vmatpush3.bf16.msra.mxu1 %v1956_v22  ;;  %v1694_v35 = vpop.f32.mrb[43].mxu0 }
 0x149   :  { %v857_v57 = vadd.f32 %v1692_v53, %v2337_v55  ;;  %v1695_v59 = vadd.f32 %v1694_v35, %v1693_v56  ;;  %1788 = vmatprep.subr.bf16.mxu1 %v1957_v52 }
 0x14b   :  { %v860_v60 = vadd.f32 %v1695_v59, %v2339_v58  ;;  %v1960_v58 = vld [vmem:[%s2419_s3 + $0xb0] sm:$0xff]   ;;  %v1135_v10 = vpack.c.bf16 %v857_v57, %v857_v57 }
 0x14c   :  { %1789 = vmatpush3.bf16.msra.mxu1 %v1957_v52 }
 0x14d   :  { %v1696_v61 = vpop.f32.mrb[44].mxu0  ;;  %1790 = vmatprep.subr.bf16.mxu1 %v1958_v40 }
 0x14e   :  { %v1697_v63 = vpop.f32.mrb[45].mxu0 }
 0x14f   :  { %v1698_v0 = vadd.f32 %v1697_v63, %v1696_v61  ;;  %v1699_v1 = vpop.f32.mrb[46].mxu0 }
 0x150   :  { %1791 = vmatpush3.bf16.msra.mxu1 %v1958_v40  ;;  %v1700_v55 = vpop.f32.mrb[47].mxu0 }
 0x151   :  { %v865_v2 = vadd.f32 %v1698_v0, %v2343_v9  ;;  %v1701_v4 = vadd.f32 %v1700_v55, %v1699_v1  ;;  %1792 = vmatprep.subr.bf16.mxu1 %v1959_v62  ;;  %v1962_v9 = vld [vmem:[%s2419_s3 + $0xc0] sm:$0xff]  }
 0x153   :  { %v868_v5 = vadd.f32 %v1701_v4, %v2345_v12  ;;  %v1255_v7 = vpack.c.bf16 %v865_v2, %v860_v60  ;;  %v1964_v12 = vld [vmem:[%s2419_s3 + $0xd0] sm:$0xff]  }
 0x154   :  { %1793 = vmatpush3.bf16.msra.mxu1 %v1959_v62 }
 0x155   :  { %1794 = vmatprep.subr.bf16.mxu1 %v1960_v58  ;;  %v1256_v18 = vpack.c.bf16 %v868_v5, %v868_v5 }
 0x158   :  { %1795 = vmatpush3.bf16.msra.mxu1 %v1960_v58 }
 0x159   :  { %1796 = vmatprep.subr.bf16.mxu1 %v1961_v8 }
 0x15c   :  { %1797 = vmatpush3.bf16.msra.mxu1 %v1961_v8 }
 0x15d   :  { %1802 = vmatprep.subr.bf16.mxu1 %v1962_v9 }
 0x15f   :  { %1799 = vmatmul.mubr.bf16.vlgmr.msra.gmra.mrb[24].mxu1 %v1135_v10 }
 0x160   :  { %1803 = vmatpush3.bf16.msra.mxu1 %v1962_v9  ;;  %1818 = vmatprep.mubr.bf16.mxu1 %v1255_v7 }
 0x161   :  { %1804 = vmatprep.subr.bf16.mxu1 %v1963_v11 }
 0x164   :  { %1805 = vmatpush3.bf16.msra.mxu1 %v1963_v11 }
 0x165   :  { %1806 = vmatprep.subr.bf16.mxu1 %v1964_v12 }
 0x168   :  { %1807 = vmatpush3.bf16.msra.mxu1 %v1964_v12 }
 0x169   :  { %1808 = vmatprep.subr.bf16.mxu1 %v1965_v13 }
 0x16c   :  { %1809 = vmatpush3.bf16.msra.mxu1 %v1965_v13 }
 0x16d   :  { %1810 = vmatprep.subr.bf16.mxu1 %v1966_v14 }
 0x170   :  { %1811 = vmatpush3.bf16.msra.mxu1 %v1966_v14 }
 0x171   :  { %1812 = vmatprep.subr.bf16.mxu1 %v1967_v15 }
 0x174   :  { %1813 = vmatpush3.bf16.msra.mxu1 %v1967_v15 }
 0x175   :  { %1814 = vmatprep.subr.bf16.mxu1 %v1968_v16 }
 0x178   :  { %1815 = vmatpush3.bf16.msra.mxu1 %v1968_v16 }
 0x179   :  { %1816 = vmatprep.subr.bf16.mxu1 %v1969_v17 }
 0x17c   :  { %1817 = vmatpush3.bf16.msra.mxu1 %v1969_v17 }
 0x17f   :  { %1819 = vmatmul.mubr.bf16.vlgmr.msra.gmra.mrb[24].mxu1 %v1256_v18 }
 0x208   :  { %v1760_v20 = vpop.f32.mrb[48].mxu0 }
 0x209   :  { %v993_v21 = vpop.f32.mrb[49].mxu0  ;;  %v1009_v25 = vadd.f32 %v1760_v20, %v1465_v38 }
 0x20a   :  { %v1761_v23 = vpop.f32.mrb[50].mxu0  ;;  %v1007_v26 = vadd.f32 %v1465_v38, %v993_v21 }
 0x20b   :  { %v996_v24 = vpop.f32.mrb[51].mxu0 }
 0x20c   :  { %v1008_v30 = vadd.f32 %v1465_v38, %v996_v24 }
 0x252   :  { %v1820_v27 = vpop.f32.mrb[24].mxu1 }
 0x253   :  { %v1823_v28 = vadd.f32 %v1820_v27, %v1009_v25  ;;  %v1356_v29 = vpop.f32.mrb[25].mxu1 }
 0x254   :  { %v1825_v31 = vadd.f32 %v1356_v29, %v1007_v26  ;;  %v1821_v32 = vpop.f32.mrb[26].mxu1 }
 0x255   :  { %1375 = vst [vmem:[%s2422_s5 + $0x10] sm:$0xff] %v1823_v28  ;;  %v1359_v51 = vpop.f32.mrb[27].mxu1 }
 0x256   :  { %1373 = vst [vmem:[%s2422_s5] sm:$0xff] %v1825_v31  ;;  %v1827_v33 = vadd.f32 %v1359_v51, %v1008_v30 }
 0x258   :  { %1374 = vst [vmem:[%s2422_s5 + $0x8] sm:$0xff] %v1827_v33 }

</bundles_post_ra>
